<compile_context>
chip_gen: v7x
topology: tpu7x:2x2x1
jax: 0.10.0
libtpu: 0.0.40
codegen_flags: <defaults>
</compile_context>

<pallas_src>
import functools

import jax
import jax.numpy as jnp
from jax.experimental import pallas as pl
from jax.experimental.pallas import tpu as pltpu


def _round_up(x, m):
    return (x + m - 1) // m * m


def _mlp_fused_kernel(*refs, num_layers, sigmoid_output):
    """refs = (x_ref, w0, b0, w1, b1, ..., w_{L-1}, b_{L-1}, o_ref).

    One (tile_m, in_dim) row-tile of the input is pushed through all layers
    with an f32 carry; only the final activation is stored (real width).
    """
    x_ref = refs[0]
    o_ref = refs[-1]
    wb = refs[1:-1]

    h = x_ref[...].astype(jnp.float32)
    for i in range(num_layers):
        w = wb[2 * i][...]
        b = wb[2 * i + 1][...].astype(jnp.float32)      # (1, out) broadcasts over rows
        # Matmul in the weights' dtype (f32, or bf16 if pre-cast); f32 accumulate.
        h = jnp.dot(h.astype(w.dtype), w, preferred_element_type=jnp.float32) + b
        if i < num_layers - 1:
            h = jnp.maximum(h, 0.0)                     # ReLU between layers
    if sigmoid_output:
        h = jax.nn.sigmoid(h)
    o_ref[...] = h.astype(o_ref.dtype)


def prepare_mlp_params(weights, biases, matmul_dtype=None):
    """One-time parameter prep (hoist out of the per-forward path).

    Reshapes biases to (1, out) f32 and optionally pre-casts weights (e.g. to
    bfloat16 for the bf16-native MXU on v5e/v6e/v7x).
    """
    w_out, b_out = [], []
    for w, b in zip(weights, biases):
        if matmul_dtype is not None:
            w = w.astype(matmul_dtype)
        w_out.append(w)
        b_out.append(jnp.reshape(b, (1, -1)).astype(jnp.float32))
    return w_out, b_out


def _dense_chain(x, weights, biases, sigmoid_output):
    """Small-M fast path: plain fused XLA dot chain (same math as the kernel)."""
    *lead, in_dim = x.shape
    h = x.reshape(-1, in_dim).astype(jnp.float32)
    for i, (w, b) in enumerate(zip(weights, biases)):
        h = jnp.dot(h.astype(w.dtype), w, preferred_element_type=jnp.float32)
        h = h + b.astype(jnp.float32)
        if i < len(weights) - 1:
            h = jnp.maximum(h, 0.0)
    if sigmoid_output:
        h = jax.nn.sigmoid(h)
    return h.astype(x.dtype).reshape(*lead, weights[-1].shape[1])


def _choose_tile_m(M, tile_m):
    m8 = _round_up(max(M, 8), 8)
    tile = min(_round_up(tile_m, 8), m8)
    # With enough rows, keep >= 2 grid steps so the "parallel" M axis can shard
    # across both TensorCores on v7x (and the pipeline has >1 step).
    if m8 >= 2048 and m8 < 2 * tile:
        tile = _round_up((m8 + 1) // 2, 8)
    return tile


def _vmem_limit_bytes(tile_m, in_dim, weights, biases, io_dtype):
    itemsize = jnp.dtype(io_dtype).itemsize
    dims = [in_dim] + [w.shape[1] for w in weights]
    max_dim = max(dims)
    est = (2 * tile_m * in_dim * itemsize          # double-buffered input tile
           + 2 * tile_m * dims[-1] * itemsize      # double-buffered output tile
           + 2 * sum(int(w.size) * jnp.dtype(w.dtype).itemsize for w in weights)
           + 2 * sum(int(b.size) * jnp.dtype(b.dtype).itemsize for b in biases)
           + 3 * tile_m * max_dim * 4              # f32 carry / matmul staging
           + (2 << 20))                            # headroom
    return int(min(48 * 2 ** 20, max(16 * 2 ** 20, est)))


def mlp_forward(x, weights, biases, sigmoid_output=False, tile_m=1024,
                min_rows_for_kernel=512, force_kernel=False):
    """x: (..., input_dim). weights[i]: (in_i, out_i); biases[i]: (out_i,) or (1, out_i)."""
    *lead, in_dim = x.shape
    M = 1
    for d in lead:
        M *= d
    num_layers = len(weights)
    out_dim = weights[-1].shape[1]

    # Bias normalization is free under jit; heavy prep (casts) lives in
    # prepare_mlp_params and is done once at init.
    biases = [jnp.reshape(b, (1, -1)) for b in biases]

    # Small-M fast path: padding copies + kernel dispatch dominate at tiny shapes.
    if not force_kernel and M < min_rows_for_kernel:
        return _dense_chain(x, weights, biases, sigmoid_output)

    x2d = x.reshape(M, in_dim)
    tile = _choose_tile_m(M, tile_m)
    m_pad = _round_up(M, tile)
    if m_pad != M:
        x2d = jnp.pad(x2d, ((0, m_pad - M), (0, 0)))

    # Input / output streamed at their REAL feature widths (full-extent last
    # block dim is legal); weights / biases are full-extent resident blocks.
    in_specs = [pl.BlockSpec((tile, in_dim), lambda i: (i, 0))]
    wb_flat = []
    for w, b in zip(weights, biases):
        wb_flat += [w, b]
        in_specs.append(pl.BlockSpec(w.shape, lambda i: (0, 0)))
        in_specs.append(pl.BlockSpec(b.shape, lambda i: (0, 0)))

    kernel = functools.partial(
        _mlp_fused_kernel, num_layers=num_layers, sigmoid_output=sigmoid_output)

    out = pl.pallas_call(
        kernel,
        out_shape=jax.ShapeDtypeStruct((m_pad, out_dim), x.dtype),
        grid=(m_pad // tile,),
        in_specs=in_specs,
        out_specs=pl.BlockSpec((tile, out_dim), lambda i: (i, 0)),
        compiler_params=pltpu.CompilerParams(
            dimension_semantics=("parallel",),
            vmem_limit_bytes=_vmem_limit_bytes(tile, in_dim, weights, biases, x.dtype),
        ),
    )(x2d, *wb_flat)

    if m_pad != M:
        out = out[:M]
    return out.reshape(*lead, out_dim)


def _reference(x, weights, biases, sigmoid_output=False):
    h = x
    for i, (w, b) in enumerate(zip(weights, biases)):
        h = h @ w + jnp.reshape(b, (1, -1))
        if i < len(weights) - 1:
            h = jnp.maximum(h, 0.0)
    if sigmoid_output:
        h = jax.nn.sigmoid(h)
    return h


if __name__ == "__main__":
    # MLP(input_dim=32, hidden_dim=32, output_dim=4, num_layers=3)
    input_dim, hidden_dim, output_dim, num_layers = 32, 32, 4, 3
    sigmoid_output = False

    key = jax.random.PRNGKey(0)
    kx, kxb, *kws = jax.random.split(key, 2 + 2 * num_layers)

    dims_in = [input_dim] + [hidden_dim] * (num_layers - 1)
    dims_out = [hidden_dim] * (num_layers - 1) + [output_dim]

    weights, biases = [], []
    for i, (din, dout) in enumerate(zip(dims_in, dims_out)):
        w = jax.random.normal(kws[2 * i], (din, dout), dtype=jnp.float32) * 0.05
        b = jax.random.normal(kws[2 * i + 1], (dout,), dtype=jnp.float32) * 0.05
        weights.append(w)
        biases.append(b)

    # One-time parameter prep (hoisted out of the per-call path).
    w_f32, b_f32 = prepare_mlp_params(weights, biases)
    w_bf16, b_bf16 = prepare_mlp_params(weights, biases, matmul_dtype=jnp.bfloat16)

    fwd_kernel = jax.jit(functools.partial(
        mlp_forward, sigmoid_output=sigmoid_output, force_kernel=True))
    fwd_auto = jax.jit(functools.partial(
        mlp_forward, sigmoid_output=sigmoid_output))

    # 1) Shipped small shape, forced through the Pallas kernel.
    B, T = 2, 8
    x_small = jax.random.normal(kx, (B, T, input_dim), dtype=jnp.float32)
    out_small = jax.block_until_ready(fwd_kernel(x_small, w_f32, b_f32))
    ref_small = _reference(x_small, weights, biases, sigmoid_output)
    assert out_small.shape == (B, T, output_dim), out_small.shape
    assert jnp.allclose(out_small, ref_small, atol=1e-5, rtol=1e-5), "kernel vs ref (small)"

    # 2) Same shape via the default path (small-M XLA fast path).
    out_fast = jax.block_until_ready(fwd_auto(x_small, w_f32, b_f32))
    assert jnp.allclose(out_fast, ref_small, atol=1e-5, rtol=1e-5), "fast path vs ref"

    # 3) Larger M: multi-step "parallel" grid (2 row-tiles of 1024).
    Bb, Tb = 2, 1024
    x_big = jax.random.normal(kxb, (Bb, Tb, input_dim), dtype=jnp.float32)
    out_big = jax.block_until_ready(fwd_auto(x_big, w_f32, b_f32))
    ref_big = _reference(x_big, weights, biases, sigmoid_output)
    assert out_big.shape == (Bb, Tb, output_dim), out_big.shape
    assert jnp.allclose(out_big, ref_big, atol=1e-5, rtol=1e-5), "kernel vs ref (big)"

    # 4) bf16-weight MXU path (pre-cast once; f32 carry) with looser tolerance.
    out_bf16 = jax.block_until_ready(fwd_kernel(x_small, w_bf16, b_bf16))
    assert jnp.allclose(out_bf16, ref_small, atol=3e-2, rtol=3e-2), "bf16 path vs ref"

    print("KERNEL_OK")
</pallas_src>

<mosaic_0001>
module attributes {stable_mosaic.version = 11 : i64} {
  func.func @_mlp_fused_kernel(%arg0: i32, %arg1: memref<16x32xf32, #tpu.memory_space<vmem>>, %arg2: memref<32x32xf32, #tpu.memory_space<vmem>>, %arg3: memref<1x32xf32, #tpu.memory_space<vmem>>, %arg4: memref<32x32xf32, #tpu.memory_space<vmem>>, %arg5: memref<1x32xf32, #tpu.memory_space<vmem>>, %arg6: memref<32x4xf32, #tpu.memory_space<vmem>>, %arg7: memref<1x4xf32, #tpu.memory_space<vmem>>, %arg8: memref<16x4xf32, #tpu.memory_space<vmem>>) attributes {dimension_semantics = [#tpu.dimension_semantics<parallel>], iteration_bounds = array<i64: 1>, scalar_prefetch = 0 : i64, scratch_operands = 0 : i64, tpu.core_type = #tpu.core_type<tc>, window_params = [{transform_indices = @transform_0, window_bounds = array<i64: 16, 32>}, {pipeline_mode = #tpu.pipeline_mode<synchronous>, transform_indices = @transform_1, window_bounds = array<i64: 32, 32>}, {pipeline_mode = #tpu.pipeline_mode<synchronous>, transform_indices = @transform_2, window_bounds = array<i64: 1, 32>}, {pipeline_mode = #tpu.pipeline_mode<synchronous>, transform_indices = @transform_3, window_bounds = array<i64: 32, 32>}, {pipeline_mode = #tpu.pipeline_mode<synchronous>, transform_indices = @transform_4, window_bounds = array<i64: 1, 32>}, {pipeline_mode = #tpu.pipeline_mode<synchronous>, transform_indices = @transform_5, window_bounds = array<i64: 32, 4>}, {pipeline_mode = #tpu.pipeline_mode<synchronous>, transform_indices = @transform_6, window_bounds = array<i64: 1, 4>}, {transform_indices = @transform_7, window_bounds = array<i64: 16, 4>}]} {
    %c0 = arith.constant 0 : index
    %c0_0 = arith.constant 0 : index
    %0 = vector.load %arg1[%c0, %c0_0] : memref<16x32xf32, #tpu.memory_space<vmem>>, vector<16x32xf32>
    %c0_1 = arith.constant 0 : index
    %c0_2 = arith.constant 0 : index
    %1 = vector.load %arg2[%c0_1, %c0_2] : memref<32x32xf32, #tpu.memory_space<vmem>>, vector<32x32xf32>
    %c0_3 = arith.constant 0 : index
    %c0_4 = arith.constant 0 : index
    %2 = vector.load %arg3[%c0_3, %c0_4] : memref<1x32xf32, #tpu.memory_space<vmem>>, vector<1x32xf32>
    %cst = arith.constant dense<0.000000e+00> : vector<16x32xf32>
    %3 = tpu.matmul %0, %1, %cst {dimension_numbers = #tpu.dot_dimension_numbers<[1], [0], [0], [1], [0, 0, 1, 1], [], []>} : vector<16x32xf32>, vector<32x32xf32>, vector<16x32xf32> -> vector<16x32xf32>
    %4 = vector.broadcast %2 : vector<1x32xf32> to vector<16x32xf32>
    %5 = arith.addf %3, %4 : vector<16x32xf32>
    %cst_5 = arith.constant 0.000000e+00 : f32
    %6 = vector.broadcast %cst_5 : f32 to vector<16x32xf32>
    %7 = arith.maximumf %5, %6 : vector<16x32xf32>
    %c0_6 = arith.constant 0 : index
    %c0_7 = arith.constant 0 : index
    %8 = vector.load %arg4[%c0_6, %c0_7] : memref<32x32xf32, #tpu.memory_space<vmem>>, vector<32x32xf32>
    %c0_8 = arith.constant 0 : index
    %c0_9 = arith.constant 0 : index
    %9 = vector.load %arg5[%c0_8, %c0_9] : memref<1x32xf32, #tpu.memory_space<vmem>>, vector<1x32xf32>
    %cst_10 = arith.constant dense<0.000000e+00> : vector<16x32xf32>
    %10 = tpu.matmul %7, %8, %cst_10 {dimension_numbers = #tpu.dot_dimension_numbers<[1], [0], [0], [1], [0, 0, 1, 1], [], []>} : vector<16x32xf32>, vector<32x32xf32>, vector<16x32xf32> -> vector<16x32xf32>
    %11 = vector.broadcast %9 : vector<1x32xf32> to vector<16x32xf32>
    %12 = arith.addf %10, %11 : vector<16x32xf32>
    %cst_11 = arith.constant 0.000000e+00 : f32
    %13 = vector.broadcast %cst_11 : f32 to vector<16x32xf32>
    %14 = arith.maximumf %12, %13 : vector<16x32xf32>
    %c0_12 = arith.constant 0 : index
    %c0_13 = arith.constant 0 : index
    %15 = vector.load %arg6[%c0_12, %c0_13] : memref<32x4xf32, #tpu.memory_space<vmem>>, vector<32x4xf32>
    %c0_14 = arith.constant 0 : index
    %c0_15 = arith.constant 0 : index
    %16 = vector.load %arg7[%c0_14, %c0_15] : memref<1x4xf32, #tpu.memory_space<vmem>>, vector<1x4xf32>
    %cst_16 = arith.constant dense<0.000000e+00> : vector<16x4xf32>
    %17 = tpu.matmul %14, %15, %cst_16 {dimension_numbers = #tpu.dot_dimension_numbers<[1], [0], [0], [1], [0, 0, 1, 1], [], []>} : vector<16x32xf32>, vector<32x4xf32>, vector<16x4xf32> -> vector<16x4xf32>
    %18 = vector.broadcast %16 : vector<1x4xf32> to vector<16x4xf32>
    %19 = arith.addf %17, %18 : vector<16x4xf32>
    %c0_17 = arith.constant 0 : index
    %c0_18 = arith.constant 0 : index
    %20 = vector.load %arg8[%c0_17, %c0_18] : memref<16x4xf32, #tpu.memory_space<vmem>>, vector<16x4xf32>
    tpu.vector_store %arg8[%c0_17, %c0_18], %19 {strides = array<i32>} : memref<16x4xf32, #tpu.memory_space<vmem>>, vector<16x4xf32>,
    return
  }
  func.func @transform_0(%arg0: i32) -> (i32, i32) {
    %c0_i32 = arith.constant 0 : i32
    %c0_i32_0 = arith.constant 0 : i32
    return %arg0, %c0_i32 : i32, i32
  }
  func.func @transform_1(%arg0: i32) -> (i32, i32) {
    %c0_i32 = arith.constant 0 : i32
    %c0_i32_0 = arith.constant 0 : i32
    %c0_i32_1 = arith.constant 0 : i32
    return %c0_i32, %c0_i32_0 : i32, i32
  }
  func.func @transform_2(%arg0: i32) -> (i32, i32) {
    %c0_i32 = arith.constant 0 : i32
    %c0_i32_0 = arith.constant 0 : i32
    %c0_i32_1 = arith.constant 0 : i32
    return %c0_i32, %c0_i32_0 : i32, i32
  }
  func.func @transform_3(%arg0: i32) -> (i32, i32) {
    %c0_i32 = arith.constant 0 : i32
    %c0_i32_0 = arith.constant 0 : i32
    %c0_i32_1 = arith.constant 0 : i32
    return %c0_i32, %c0_i32_0 : i32, i32
  }
  func.func @transform_4(%arg0: i32) -> (i32, i32) {
    %c0_i32 = arith.constant 0 : i32
    %c0_i32_0 = arith.constant 0 : i32
    %c0_i32_1 = arith.constant 0 : i32
    return %c0_i32, %c0_i32_0 : i32, i32
  }
  func.func @transform_5(%arg0: i32) -> (i32, i32) {
    %c0_i32 = arith.constant 0 : i32
    %c0_i32_0 = arith.constant 0 : i32
    %c0_i32_1 = arith.constant 0 : i32
    return %c0_i32, %c0_i32_0 : i32, i32
  }
  func.func @transform_6(%arg0: i32) -> (i32, i32) {
    %c0_i32 = arith.constant 0 : i32
    %c0_i32_0 = arith.constant 0 : i32
    %c0_i32_1 = arith.constant 0 : i32
    return %c0_i32, %c0_i32_0 : i32, i32
  }
  func.func @transform_7(%arg0: i32) -> (i32, i32) {
    %c0_i32 = arith.constant 0 : i32
    %c0_i32_0 = arith.constant 0 : i32
    return %arg0, %c0_i32 : i32, i32
  }
}

</mosaic_0001>

<bundles_post_ra>
// kernel: mlp_forward.1
= control target key start
LH: loop header
LB: loop body
LE: loop exit
PB: predicated region body
PF: predicated region fallthrough
CT: control target
= control target key end

     0   :  { %12 = vsyncpa [#allocation3], 0  ;;  %s595_s0 = inlined_call_operand.hbm [shape: f32[16,32], index: 0, kind: input, shape index: {}]   ;;  %s596_s1 = inlined_call_operand.vmem [shape: f32[32,32], index: 1, kind: input, shape index: {}]   ;;  %s597_s2 = inlined_call_operand.vmem [shape: f32[1,32], index: 2, kind: input, shape index: {}]   ;;  %s598_s3 = inlined_call_operand.hbm [shape: f32[32,32], index: 3, kind: input, shape index: {}]   ;;  %s599_s4 = inlined_call_operand.vmem [shape: f32[1,32], index: 4, kind: input, shape index: {}]   ;;  %s600_s5 = inlined_call_operand.vmem [shape: f32[32,4], index: 5, kind: input, shape index: {}]   ;;  %s601_s6 = inlined_call_operand.vmem [shape: f32[1,4], index: 6, kind: input, shape index: {}]   ;;  %s602_s7 = inlined_call_operand.vmem [shape: f32[16,4], index: 7, kind: output, shape index: {}]  }
   0x1   :  { %13 = vsyncpa [#allocation5], 0  ;;  %s482_s24 = smov [#allocation2]   ;;  %s434_s28 = scalar_lea.hbm %s595_s0, 256 }
   0x2   :  { %s19_s25 = sshll.u32 %s482_s24, 4  ;;  %p435_p0 = scmp.ne.s32.totalorder %s595_s0, %s434_s28  ;;  %s20_s25 = int_to_ptr.vmem [resolvable:$true] %s19_s25 }
   0x3   :  { %p438_p1 = scmp.lt.u32.totalorder %s434_s28, %s595_s0 }
   0x5   :  { %p440_p2 = pnand %p438_p1, %p435_p0 }
   0x7   :  { %443 = shalt.err (!%p440_p2)
}
   0x8   :  { %s444_s10 = scalar_lea.vmem %s20_s25, 256  ;;  %p449_p4 = scmp.lt.s32.totalorder %s20_s25, %s20_s25 }
   0x9   :  { %p445_p3 = scmp.ne.s32.totalorder %s20_s25, %s444_s10  ;;  %p450_p5 = scmp.lt.s32.totalorder %s444_s10, %s444_s10 }
   0xb   :  { %p451_p6 = por %p450_p5, %p449_p4 }
   0xd   :  { %p452_p7 = pnand %p451_p6, %p445_p3 }
   0xf   :  { %455 = shalt.err (!%p452_p7)
}
  0x10   :  { %s483_s11 = smov 128   ;;  %s484_s12 = smov 8  }
  0x11   :  { %25 = dma.hbm_to_vmem [thread:$0]  %s595_s0, 256, %s20_s25, [#allocation3], %s483_s11, %s483_s11, %s484_s12  }
  0x12   :  { %s485_s15 = smov [#allocation4]   ;;  %s456_s19 = scalar_lea.hbm %s598_s3, 512 }
  0x13   :  { %s35_s16 = sshll.u32 %s485_s15, 4  ;;  %p457_p8 = scmp.ne.s32.totalorder %s598_s3, %s456_s19  ;;  %s36_s16 = int_to_ptr.vmem [resolvable:$true] %s35_s16 }
  0x14   :  { %p460_p9 = scmp.lt.u32.totalorder %s456_s19, %s598_s3 }
  0x16   :  { %p462_p10 = pnand %p460_p9, %p457_p8 }
  0x18   :  { %465 = shalt.err (!%p462_p10)
}
  0x19   :  { %s466_s24 = scalar_lea.vmem %s36_s16, 512  ;;  %p471_p12 = scmp.lt.s32.totalorder %s36_s16, %s36_s16 }
  0x1a   :  { %p467_p11 = scmp.ne.s32.totalorder %s36_s16, %s466_s24  ;;  %p472_p13 = scmp.lt.s32.totalorder %s466_s24, %s466_s24 }
  0x1c   :  { %p473_p0 = por %p472_p13, %p471_p12 }
  0x1e   :  { %p474_p1 = pnand %p473_p0, %p467_p11 }
  0x20   :  { %477 = shalt.err (!%p474_p1)
}
  0x21   :  { %41 = dma.hbm_to_vmem [thread:$0]  %s598_s3, 512, %s36_s16, [#allocation5], %s483_s11, %s483_s11, %s484_s12  }
  0x22   :  { %478 = dma.done.wait [#allocation3], 256  }
  0x23   :  { %479 = vsyncadd [#allocation3], 4294967040 }
  0x24   :  { %480 = dma.done.wait [#allocation5], 512  }
  0x25   :  { %481 = vsyncadd [#allocation5], 4294966784  ;;  %vm67_vm0 = vcmask 261120   ;;  %v56_v0 = vld [vmem:[%s596_s1] sm:$0xff]  ;;  %v57_v1 = vld [vmem:[%s596_s1 + $0x8] sm:$0xff]  ;;  %vm337_vm1 = vcmask 31744  }
  0x26   :  { %v58_v2 = vld [vmem:[%s596_s1 + $0x10] sm:$0xff]  ;;  %v406_v3 = vpack.c.bf16 %v57_v1, %v56_v0  ;;  %v59_v4 = vld [vmem:[%s596_s1 + $0x18] sm:$0xff]  ;;  %v54_v5 = vld [vmem:[#allocation2] sm:$0xff] }
  0x27   :  { %v410_v6 = vpack.c.bf16 %v59_v4, %v58_v2  ;;  %381 = vmatprep.mubr.msk.f32.mxu0 %vm67_vm0, %v54_v5  ;;  %v151_v7 = vld [vmem:[#allocation4] sm:$0xff]  ;;  %v152_v8 = vld [vmem:[#allocation4 + $0x8] sm:$0xff]  ;;  %v55_v10 = vld [vmem:[#allocation2 + $0x8] sm:$0xff] }
  0x28   :  { %407 = vmatprep.subr.bf16.mxu0 %v406_v3  ;;  %v414_v9 = vpack.c.bf16 %v152_v8, %v151_v7  ;;  %v153_v11 = vld [vmem:[#allocation4 + $0x10] sm:$0xff]  ;;  %v154_v12 = vld [vmem:[#allocation4 + $0x18] sm:$0xff]  ;;  %v247_v24 = vld [vmem:[%s600_s5 + $0x10] sm:$0xff] }
  0x29   :  { %409 = vmatpush3.bf16.msra.mxu0 %v406_v3  ;;  %v418_v13 = vpack.c.bf16 %v154_v12, %v153_v11  ;;  %v245_v14 = vld [vmem:[%s600_s5] sm:$0xff]  ;;  %v246_v15 = vld [vmem:[%s600_s5 + $0x8] sm:$0xff]  ;;  %v248_v25 = vld [vmem:[%s600_s5 + $0x18] sm:$0xff] }
  0x2a   :  { %411 = vmatprep.subr.bf16.mxu0 %v410_v6  ;;  %415 = vmatprep.subr.bf16.mxu1 %v414_v9  ;;  %v422_v16 = vpack.c.bf16 %v246_v15, %v245_v14  ;;  %v346_v17 = vld [vmem:[%s597_s2] ss:$0 sm:$0xff]  ;;  %v426_v26 = vpack.c.bf16 %v248_v25, %v247_v24 }
  0x2b   :  { %417 = vmatpush3.bf16.msra.mxu1 %v414_v9  ;;  %v349_v27 = vld [vmem:[%s599_s4] ss:$0 sm:$0xff] }
  0x2c   :  { %419 = vmatprep.subr.bf16.mxu1 %v418_v13  ;;  %v352_v34 = vld [vmem:[%s601_s6] ss:$0 sm:$0xff] }
  0x2d   :  { %413 = vmatpush3.bf16.msra.mxu0 %v410_v6 }
  0x2e   :  { %423 = vmatprep.subr.bf16.mxu0 %v422_v16 }
  0x2f   :  { %421 = vmatpush3.bf16.msra.mxu1 %v418_v13 }
  0x30   :  { %382 = vmatmul.mubr.msk.f32.vlgmr.msra.gmra.mrb[0].mxu0 %vm67_vm0, %v55_v10 }
  0x31   :  { %425 = vmatpush3.bf16.msra.mxu0 %v422_v16 }
  0x32   :  { %427 = vmatprep.subr.bf16.mxu0 %v426_v26 }
  0x35   :  { %429 = vmatpush3.bf16.msra.mxu0 %v426_v26 }
 0x103   :  { %v383_v18 = vpop.f32.mrb[0].mxu0 }
 0x104   :  { %v146_v19 = vadd.f32 %v383_v18, %v346_v17  ;;  %v140_v20 = vpop.f32.mrb[1].mxu0 }
 0x105   :  { %v141_v21 = vadd.f32 %v346_v17, %v140_v20 }
 0x106   :  { %v150_v23 = vmax.f32 %v146_v19, 0.0 }
 0x107   :  { %v149_v22 = vmax.f32 %v141_v21, 0.0 }
 0x109   :  { %392 = vmatprep.mubr.msk.f32.mxu1 %vm67_vm0, %v149_v22 }
 0x10a   :  { %393 = vmatmul.mubr.msk.f32.vlgmr.msra.gmra.mrb[0].mxu1 %vm67_vm0, %v150_v23 }
 0x1dd   :  { %v394_v28 = vpop.f32.mrb[0].mxu1 }
 0x1de   :  { %v240_v29 = vadd.f32 %v394_v28, %v349_v27  ;;  %v234_v30 = vpop.f32.mrb[1].mxu1 }
 0x1df   :  { %v235_v31 = vadd.f32 %v349_v27, %v234_v30 }
 0x1e0   :  { %v244_v33 = vmax.f32 %v240_v29, 0.0 }
 0x1e1   :  { %v243_v32 = vmax.f32 %v235_v31, 0.0 }
 0x1e3   :  { %403 = vmatprep.mubr.msk.f32.mxu0 %vm67_vm0, %v243_v32 }
 0x1e4   :  { %404 = vmatmul.mubr.msk.f32.vlgmr.msra.gmra.mrb[2].mxu0 %vm67_vm0, %v244_v33 }
 0x2b7   :  { %v405_v35 = vpop.f32.mrb[2].mxu0 }
 0x2b8   :  { %v334_v36 = vadd.f32 %v405_v35, %v352_v34  ;;  %v328_v37 = vpop.f32.mrb[3].mxu0 }
 0x2b9   :  { %v329_v38 = vadd.f32 %v352_v34, %v328_v37 }
 0x2ba   :  { %339 = vst.msk [vmem:[%s602_s7 + $0x8] sm:$0xff] %vm337_vm1, %v334_v36 }
 0x2bb   :  { %338 = vst.msk [vmem:[%s602_s7] sm:$0xff] %vm337_vm1, %v329_v38 }
 0x2bc   :  { %344 = vsyncpa [#allocation3], 1 }
 0x2bd   :  { %345 = vsyncpa [#allocation5], 1 }

</bundles_post_ra>
